<compile_context>
chip_gen: v7x
topology: tpu7x:2x2x1
jax: 0.10.0
libtpu: 0.0.40
codegen_flags: <defaults>
</compile_context>

<pallas_src>
import jax
import jax.numpy as jnp
from jax.experimental import pallas as pl
from jax.experimental.pallas import tpu as pltpu

NUM_HEADS = 5
HIDDEN = 32
OUT = 2
H_TOT = NUM_HEADS * HIDDEN   # 160
O_TOT = NUM_HEADS * OUT      # 10

_MAX_BATCH_TILE = 512        # keeps x / output tiles VMEM-friendly on v7x (64 MiB)


def _fused_kernel(x_ref, w1_ref, b1_ref, w2_ref, b2_ref, o_ref):
    # One grid step == one batch tile; both head layers fused into two MXU dots.
    x = x_ref[...]                                                     # (TB, D)
    h = jnp.dot(x, w1_ref[...],
                preferred_element_type=jnp.float32) + b1_ref[...]      # (TB, 160)
    # Dropout(0.1) is identity in eval/inference mode (PyTorch semantics).
    # TODO(synk): training-mode dropout masking not implemented (inference path).
    out = jnp.dot(h, w2_ref[...],
                  preferred_element_type=jnp.float32) + b2_ref[...]    # (TB, 10)
    o_ref[...] = out.astype(o_ref.dtype)


def output_layer_forward(x, w1, b1, w2, b2):
    """x: (B, D); w1: (5, D, 32); b1: (5, 32); w2: (5, 32, 2); b2: (5, 2).

    Returns a tuple of 5 arrays, each (B, 2): (hair, gender, earring, smile, front_face).
    """
    B, D = x.shape

    # ---- Fuse the 5 heads (wrapper-side layout plumbing, not extra compute). ----
    # First layer: concat per-head (D, 32) weights along the output dim -> (D, 160).
    w1_cat = jnp.transpose(w1, (1, 0, 2)).reshape(D, H_TOT)
    b1_cat = b1.reshape(1, H_TOT)
    # Second layer: block-diagonal (160, 10) so head h only sees its own 32 hiddens.
    eye = jnp.eye(NUM_HEADS, dtype=w2.dtype)[:, :, None, None]          # (5, 5, 1, 1)
    w2_bd = (w2[:, None, :, :] * eye).transpose(0, 2, 1, 3).reshape(H_TOT, O_TOT)
    b2_cat = b2.reshape(1, O_TOT)

    # ---- Batch tiling: single grid step for small B, parallel tiles for large B. ----
    if B <= _MAX_BATCH_TILE:
        tb = B
        n_tiles = 1
        x_p = x
    else:
        tb = _MAX_BATCH_TILE
        n_tiles = pl.cdiv(B, tb)
        pad = n_tiles * tb - B
        x_p = jnp.pad(x, ((0, pad), (0, 0))) if pad else x

    out = pl.pallas_call(
        _fused_kernel,
        out_shape=jax.ShapeDtypeStruct((n_tiles * tb, O_TOT), jnp.float32),
        grid=(n_tiles,),
        in_specs=[
            pl.BlockSpec((tb, D), lambda i: (i, 0)),         # x batch tile
            pl.BlockSpec((D, H_TOT), lambda i: (0, 0)),      # fused W1 (resident)
            pl.BlockSpec((1, H_TOT), lambda i: (0, 0)),      # fused b1
            pl.BlockSpec((H_TOT, O_TOT), lambda i: (0, 0)),  # block-diagonal W2
            pl.BlockSpec((1, O_TOT), lambda i: (0, 0)),      # fused b2
        ],
        out_specs=pl.BlockSpec((tb, O_TOT), lambda i: (i, 0)),
        compiler_params=pltpu.CompilerParams(
            dimension_semantics=("parallel",),
        ),
    )(x_p, w1_cat, b1_cat, w2_bd, b2_cat)

    out = out[:B]
    # Per-head split outside the kernel (cheap slices of the lane-dense slab).
    return tuple(out[:, h * OUT:(h + 1) * OUT] for h in range(NUM_HEADS))


def _init_params(key, input_size):
    # Deterministic synthetic parameters (PyTorch-Linear-like uniform init).
    keys = jax.random.split(key, 4)
    lim1 = 1.0 / jnp.sqrt(jnp.float32(input_size))
    lim2 = 1.0 / jnp.sqrt(jnp.float32(HIDDEN))
    w1 = jax.random.uniform(keys[0], (NUM_HEADS, input_size, HIDDEN),
                            jnp.float32, -lim1, lim1)
    b1 = jax.random.uniform(keys[1], (NUM_HEADS, HIDDEN), jnp.float32, -lim1, lim1)
    w2 = jax.random.uniform(keys[2], (NUM_HEADS, HIDDEN, OUT),
                            jnp.float32, -lim2, lim2)
    b2 = jax.random.uniform(keys[3], (NUM_HEADS, OUT), jnp.float32, -lim2, lim2)
    return w1, b1, w2, b2


def _reference(x, w1, b1, w2, b2):
    outs = []
    for h in range(NUM_HEADS):
        hid = x @ w1[h] + b1[h]
        outs.append(hid @ w2[h] + b2[h])
    return tuple(outs)


if __name__ == "__main__":
    batch = 8
    input_size = 64

    key = jax.random.PRNGKey(0)
    kx, kp = jax.random.split(key)
    x = jax.random.normal(kx, (batch, input_size), jnp.float32)
    w1, b1, w2, b2 = _init_params(kp, input_size)

    outs = output_layer_forward(x, w1, b1, w2, b2)
    outs = jax.block_until_ready(outs)

    refs = _reference(x, w1, b1, w2, b2)
    for o, r in zip(outs, refs):
        assert o.shape == (batch, OUT)
        assert jnp.allclose(o, r, atol=1e-5, rtol=1e-5)

    print("KERNEL_OK")
</pallas_src>

<mosaic_0001>
module attributes {stable_mosaic.version = 11 : i64} {
  func.func @_fused_kernel(%arg0: i32, %arg1: memref<8x64xf32, #tpu.memory_space<vmem>>, %arg2: memref<64x160xf32, #tpu.memory_space<vmem>>, %arg3: memref<1x160xf32, #tpu.memory_space<vmem>>, %arg4: memref<160x10xf32, #tpu.memory_space<vmem>>, %arg5: memref<1x10xf32, #tpu.memory_space<vmem>>, %arg6: memref<8x10xf32, #tpu.memory_space<vmem>>) attributes {dimension_semantics = [#tpu.dimension_semantics<parallel>], iteration_bounds = array<i64: 1>, scalar_prefetch = 0 : i64, scratch_operands = 0 : i64, tpu.core_type = #tpu.core_type<tc>, window_params = [{transform_indices = @transform_0, window_bounds = array<i64: 8, 64>}, {pipeline_mode = #tpu.pipeline_mode<synchronous>, transform_indices = @transform_1, window_bounds = array<i64: 64, 160>}, {pipeline_mode = #tpu.pipeline_mode<synchronous>, transform_indices = @transform_2, window_bounds = array<i64: 1, 160>}, {pipeline_mode = #tpu.pipeline_mode<synchronous>, transform_indices = @transform_3, window_bounds = array<i64: 160, 10>}, {pipeline_mode = #tpu.pipeline_mode<synchronous>, transform_indices = @transform_4, window_bounds = array<i64: 1, 10>}, {transform_indices = @transform_5, window_bounds = array<i64: 8, 10>}]} {
    %c0 = arith.constant 0 : index
    %c0_0 = arith.constant 0 : index
    %0 = vector.load %arg1[%c0, %c0_0] : memref<8x64xf32, #tpu.memory_space<vmem>>, vector<8x64xf32>
    %c0_1 = arith.constant 0 : index
    %c0_2 = arith.constant 0 : index
    %1 = vector.load %arg2[%c0_1, %c0_2] : memref<64x160xf32, #tpu.memory_space<vmem>>, vector<64x160xf32>
    %cst = arith.constant dense<0.000000e+00> : vector<8x160xf32>
    %2 = tpu.matmul %0, %1, %cst {dimension_numbers = #tpu.dot_dimension_numbers<[1], [0], [0], [1], [0, 0, 1, 1], [], []>} : vector<8x64xf32>, vector<64x160xf32>, vector<8x160xf32> -> vector<8x160xf32>
    %c0_3 = arith.constant 0 : index
    %c0_4 = arith.constant 0 : index
    %3 = vector.load %arg3[%c0_3, %c0_4] : memref<1x160xf32, #tpu.memory_space<vmem>>, vector<1x160xf32>
    %4 = vector.broadcast %3 : vector<1x160xf32> to vector<8x160xf32>
    %5 = arith.addf %2, %4 : vector<8x160xf32>
    %c0_5 = arith.constant 0 : index
    %c0_6 = arith.constant 0 : index
    %6 = vector.load %arg4[%c0_5, %c0_6] : memref<160x10xf32, #tpu.memory_space<vmem>>, vector<160x10xf32>
    %cst_7 = arith.constant dense<0.000000e+00> : vector<8x10xf32>
    %7 = tpu.matmul %5, %6, %cst_7 {dimension_numbers = #tpu.dot_dimension_numbers<[1], [0], [0], [1], [0, 0, 1, 1], [], []>} : vector<8x160xf32>, vector<160x10xf32>, vector<8x10xf32> -> vector<8x10xf32>
    %c0_8 = arith.constant 0 : index
    %c0_9 = arith.constant 0 : index
    %8 = vector.load %arg5[%c0_8, %c0_9] : memref<1x10xf32, #tpu.memory_space<vmem>>, vector<1x10xf32>
    %9 = vector.broadcast %8 : vector<1x10xf32> to vector<8x10xf32>
    %10 = arith.addf %7, %9 : vector<8x10xf32>
    %c0_10 = arith.constant 0 : index
    %c0_11 = arith.constant 0 : index
    %11 = vector.load %arg6[%c0_10, %c0_11] : memref<8x10xf32, #tpu.memory_space<vmem>>, vector<8x10xf32>
    tpu.vector_store %arg6[%c0_10, %c0_11], %10 {strides = array<i32>} : memref<8x10xf32, #tpu.memory_space<vmem>>, vector<8x10xf32>,
    return
  }
  func.func @transform_0(%arg0: i32) -> (i32, i32) {
    %c0_i32 = arith.constant 0 : i32
    %c0_i32_0 = arith.constant 0 : i32
    return %arg0, %c0_i32 : i32, i32
  }
  func.func @transform_1(%arg0: i32) -> (i32, i32) {
    %c0_i32 = arith.constant 0 : i32
    %c0_i32_0 = arith.constant 0 : i32
    %c0_i32_1 = arith.constant 0 : i32
    return %c0_i32, %c0_i32_0 : i32, i32
  }
  func.func @transform_2(%arg0: i32) -> (i32, i32) {
    %c0_i32 = arith.constant 0 : i32
    %c0_i32_0 = arith.constant 0 : i32
    %c0_i32_1 = arith.constant 0 : i32
    return %c0_i32, %c0_i32_0 : i32, i32
  }
  func.func @transform_3(%arg0: i32) -> (i32, i32) {
    %c0_i32 = arith.constant 0 : i32
    %c0_i32_0 = arith.constant 0 : i32
    %c0_i32_1 = arith.constant 0 : i32
    return %c0_i32, %c0_i32_0 : i32, i32
  }
  func.func @transform_4(%arg0: i32) -> (i32, i32) {
    %c0_i32 = arith.constant 0 : i32
    %c0_i32_0 = arith.constant 0 : i32
    %c0_i32_1 = arith.constant 0 : i32
    return %c0_i32, %c0_i32_0 : i32, i32
  }
  func.func @transform_5(%arg0: i32) -> (i32, i32) {
    %c0_i32 = arith.constant 0 : i32
    %c0_i32_0 = arith.constant 0 : i32
    return %arg0, %c0_i32 : i32, i32
  }
}

</mosaic_0001>

<bundles_post_ra>
// kernel: tpu_custom_call.1
= control target key start
LH: loop header
LB: loop body
LE: loop exit
PB: predicated region body
PF: predicated region fallthrough
CT: control target
= control target key end

     0   :  { %v318_v7 = vmov 0.0   ;;  %v319_v8 = vmov 0.0|0.0   ;;  %s490_s0 = inlined_call_operand.vmem [shape: f32[8,64], index: 0, kind: input, shape index: {}]   ;;  %s491_s1 = inlined_call_operand.vmem [shape: f32[64,160], index: 1, kind: input, shape index: {}]   ;;  %s492_s2 = inlined_call_operand.vmem [shape: f32[1,160], index: 2, kind: input, shape index: {}]   ;;  %s493_s3 = inlined_call_operand.vmem [shape: f32[160,10], index: 3, kind: input, shape index: {}]   ;;  %s494_s4 = inlined_call_operand.vmem [shape: f32[1,10], index: 4, kind: input, shape index: {}]   ;;  %s495_s5 = inlined_call_operand.hbm [shape: f32[8,10], index: 5, kind: output, shape index: {}]  }
   0x1   :  { %v23_v0 = vld [vmem:[%s491_s1 + $0x8] sm:$0xff]  ;;  %v25_v1 = vld [vmem:[%s491_s1 + $0x18] sm:$0xff]  ;;  %v22_v2 = vld [vmem:[%s491_s1] sm:$0xff]  ;;  %118 = vmatprep.mubr.f32.mxu0 %v318_v7  ;;  %261 = vmatprep.subr.bf16.mxu1 %v319_v8 }
   0x2   :  { %v245_v3 = vpack.c.bf16 %v25_v1, %v23_v0  ;;  %v24_v4 = vld [vmem:[%s491_s1 + $0x10] sm:$0xff]  ;;  %v27_v5 = vld [vmem:[%s491_s1 + $0x28] sm:$0xff]  ;;  %v29_v6 = vld [vmem:[%s491_s1 + $0x38] sm:$0xff] }
   0x3   :  { %v247_v9 = vpack.c.bf16 %v24_v4, %v22_v2  ;;  %v249_v10 = vpack.c.bf16 %v29_v6, %v27_v5  ;;  %v26_v11 = vld [vmem:[%s491_s1 + $0x20] sm:$0xff]  ;;  %v28_v12 = vld [vmem:[%s491_s1 + $0x30] sm:$0xff]  ;;  %v31_v13 = vld [vmem:[%s491_s1 + $0x48] sm:$0xff] }
   0x4   :  { %246 = vmatprep.subr.bf16.mxu0 %v245_v3  ;;  %v33_v14 = vld [vmem:[%s491_s1 + $0x58] sm:$0xff]  ;;  %v251_v15 = vpack.c.bf16 %v28_v12, %v26_v11  ;;  %v30_v16 = vld [vmem:[%s491_s1 + $0x40] sm:$0xff]  ;;  %v32_v17 = vld [vmem:[%s491_s1 + $0x50] sm:$0xff] }
   0x5   :  { %248 = vmatpush1.bf16.msra.mxu0 %v247_v9  ;;  %v253_v18 = vpack.c.bf16 %v33_v14, %v31_v13  ;;  %v35_v19 = vld [vmem:[%s491_s1 + $0x68] sm:$0xff]  ;;  %v37_v20 = vld [vmem:[%s491_s1 + $0x78] sm:$0xff]  ;;  %v125_v21 = vld [vmem:[%s493_s3] sm:$0xff]  ;;  %v255_v26 = vpack.c.bf16 %v32_v17, %v30_v16 }
   0x6   :  { %250 = vmatprep.subr.bf16.mxu0 %v249_v10  ;;  %v126_v22 = vld [vmem:[%s493_s3 + $0x8] sm:$0xff]  ;;  %v127_v23 = vld [vmem:[%s493_s3 + $0x10] sm:$0xff]  ;;  %v128_v24 = vld [vmem:[%s493_s3 + $0x18] sm:$0xff]  ;;  %v257_v27 = vpack.c.bf16 %v37_v20, %v35_v19 }
   0x7   :  { %v262_v25 = vpack.c.bf16 %v126_v22, %v125_v21  ;;  %v34_v28 = vld [vmem:[%s491_s1 + $0x60] sm:$0xff]  ;;  %v36_v29 = vld [vmem:[%s491_s1 + $0x70] sm:$0xff]  ;;  %v265_v30 = vpack.c.bf16 %v128_v24, %v127_v23  ;;  %v130_v32 = vld [vmem:[%s493_s3 + $0x28] sm:$0xff] }
   0x8   :  { %v129_v31 = vld [vmem:[%s493_s3 + $0x20] sm:$0xff]  ;;  %v259_v33 = vpack.c.bf16 %v36_v29, %v34_v28 }
   0x9   :  { %252 = vmatpush1.bf16.msra.mxu0 %v251_v15  ;;  %263 = vmatpush1.bf16.msra.mxu1 %v262_v25 }
   0xa   :  { %254 = vmatprep.subr.bf16.mxu0 %v253_v18  ;;  %264 = vmatprep.subr.bf16.mxu1 %v319_v8 }
   0xd   :  { %256 = vmatpush1.bf16.msra.mxu0 %v255_v26 }
   0xe   :  { %10 = vsyncpa [#allocation3], 0  ;;  %258 = vmatprep.subr.bf16.mxu0 %v257_v27  ;;  %266 = vmatpush1.bf16.msra.mxu1 %v265_v30  ;;  %v268_v34 = vpack.c.bf16 %v130_v32, %v129_v31  ;;  %v131_v35 = vld [vmem:[%s493_s3 + $0x30] sm:$0xff]  ;;  %v132_v36 = vld [vmem:[%s493_s3 + $0x38] sm:$0xff]  ;;  %vm50_vm0 = vcmask 523264   ;;  %v40_v57 = vlaneseq  ;;  %vm152_vm1 = vcmask 261120  }
   0xf   :  { %267 = vmatprep.subr.bf16.mxu1 %v319_v8  ;;  %v21_v37 = vld [vmem:[%s490_s0] sm:$0xff]  ;;  %v271_v38 = vpack.c.bf16 %v132_v36, %v131_v35  ;;  %v134_v40 = vld [vmem:[%s493_s3 + $0x48] sm:$0xff]  ;;  %v135_v42 = vld [vmem:[%s493_s3 + $0x50] sm:$0xff]  ;;  %s320_s17 = smov [#allocation2]   ;;  %vm226_vm2 = vcmask 80896  }
  0x10   :  { %v133_v39 = vld [vmem:[%s493_s3 + $0x40] sm:$0xff]  ;;  %v136_v43 = vld [vmem:[%s493_s3 + $0x58] sm:$0xff]  ;;  %v138_v46 = vld [vmem:[%s493_s3 + $0x68] sm:$0xff]  ;;  %v41_v58 = vshrl.u32 %v40_v57, 7  ;;  %s234_s18 = sshll.u32 %s320_s17, 4  ;;  %s235_s18 = int_to_ptr.vmem [resolvable:$true] %s234_s18 }
  0x11   :  { %260 = vmatpush1.bf16.msra.mxu0 %v259_v33  ;;  %v274_v41 = vpack.c.bf16 %v134_v40, %v133_v39  ;;  %v277_v44 = vpack.c.bf16 %v136_v43, %v135_v42  ;;  %v137_v45 = vld [vmem:[%s493_s3 + $0x60] sm:$0xff]  ;;  %v139_v48 = vld [vmem:[%s493_s3 + $0x70] sm:$0xff]  ;;  %v140_v49 = vld [vmem:[%s493_s3 + $0x78] sm:$0xff]  ;;  %p299_p1 = scmp.lt.s32.totalorder %s235_s18, %s235_s18 }
  0x12   :  { %269 = vmatpush1.bf16.msra.mxu1 %v268_v34  ;;  %v280_v47 = vpack.c.bf16 %v138_v46, %v137_v45  ;;  %v283_v50 = vpack.c.bf16 %v140_v49, %v139_v48  ;;  %v141_v51 = vld [vmem:[%s493_s3 + $0x80] sm:$0xff]  ;;  %v142_v52 = vld [vmem:[%s493_s3 + $0x88] sm:$0xff]  ;;  %v143_v54 = vld [vmem:[%s493_s3 + $0x90] sm:$0xff]  ;;  %v46_v59 = vsub.s32 1, %v41_v58  ;;  %v42_v61 = vsub.s32 0, %v41_v58 }
  0x13   :  { %270 = vmatprep.subr.bf16.mxu1 %v319_v8  ;;  %v286_v53 = vpack.c.bf16 %v142_v52, %v141_v51  ;;  %v144_v55 = vld [vmem:[%s493_s3 + $0x98] sm:$0xff]  ;;  %v38_v60 = vld [vmem:[%s492_s2] sm:$0x3]  ;;  %s294_s2 = scalar_lea.vmem %s235_s18, 128 }
  0x14   :  { %242 = vmatmul.mubr.msk.f32.vlgmr.msra.gmra.mrb[0].mxu0 %vm50_vm0, %v21_v37  ;;  %v289_v56 = vpack.c.bf16 %v144_v55, %v143_v54  ;;  %v47_v62 = vrot.slane %v38_v60, %v46_v59  ;;  %v43_v63 = vrot.slane %v38_v60, %v42_v61  ;;  %v243_v4 = vld [vmem:[%s494_s4] ss:$0 sm:$0xff]  ;;  %p295_p0 = scmp.ne.s32.totalorder %s235_s18, %s294_s2  ;;  %p300_p2 = scmp.lt.s32.totalorder %s294_s2, %s294_s2 }
  0x16   :  { %272 = vmatpush1.bf16.msra.mxu1 %v271_v38  ;;  %p301_p3 = por %p300_p2, %p299_p1 }
  0x17   :  { %273 = vmatprep.subr.bf16.mxu1 %v319_v8 }
  0x18   :  { %p302_p4 = pnand %p301_p3, %p295_p0 }
  0x1a   :  { %275 = vmatpush1.bf16.msra.mxu1 %v274_v41 }
  0x1b   :  { %276 = vmatprep.subr.bf16.mxu1 %v319_v8 }
  0x1e   :  { %278 = vmatpush1.bf16.msra.mxu1 %v277_v44 }
  0x1f   :  { %279 = vmatprep.subr.bf16.mxu1 %v319_v8 }
  0x22   :  { %281 = vmatpush1.bf16.msra.mxu1 %v280_v47 }
  0x23   :  { %282 = vmatprep.subr.bf16.mxu1 %v319_v8 }
  0x26   :  { %284 = vmatpush1.bf16.msra.mxu1 %v283_v50 }
  0x27   :  { %285 = vmatprep.subr.bf16.mxu1 %v319_v8 }
  0x2a   :  { %287 = vmatpush1.bf16.msra.mxu1 %v286_v53 }
  0x2b   :  { %288 = vmatprep.subr.bf16.mxu1 %v319_v8 }
  0x2e   :  { %290 = vmatpush1.bf16.msra.mxu1 %v289_v56 }
  0xe7   :  { %v120_v0 = vpop.f32.mrb[0].mxu0 }
  0xe8   :  { %v122_v1 = vpop.f32.mrb[1].mxu0  ;;  %v121_v3 = vadd.f32 %v120_v0, %v43_v63 }
  0xe9   :  { %v123_v2 = vadd.f32 %v122_v1, %v47_v62 }
  0xeb   :  { %244 = vmatprep.mubr.msk.f32.mxu1 %vm152_vm1, %v123_v2 }
  0xec   :  { %221 = vmatmul.mubr.f32.vlgmr.msra.gmra.mrb[0].mxu1 %v121_v3 }
 0x1bf   :  { %v222_v5 = vpop.f32.mrb[0].mxu1 }
 0x1c0   :  { %v223_v6 = vadd.f32 %v243_v4, %v222_v5  ;;  %v224_v7 = vpop.f32.mrb[1].mxu1 }
 0x1c2   :  { %227 = vst.msk [vmem:[#allocation2] sm:$0xff] %vm226_vm2, %v223_v6 }
 0x1c3   :  { %305 = shalt.err (!%p302_p4)
}
 0x1c4   :  { %s306_s21 = scalar_lea.hbm %s495_s5, 128 }
 0x1c5   :  { %p307_p5 = scmp.ne.s32.totalorder %s495_s5, %s306_s21  ;;  %p310_p6 = scmp.lt.u32.totalorder %s306_s21, %s495_s5 }
 0x1c7   :  { %p312_p7 = pnand %p310_p6, %p307_p5 }
 0x1c9   :  { %315 = shalt.err (!%p312_p7)
}
 0x1ca   :  { %237 = dma.vmem_to_hbm [thread:$0]  %s235_s18, 128, %s495_s5, [#allocation3]  }
 0x1cb   :  { %316 = dma.done.wait [#allocation3], 128  }
 0x1cc   :  { %317 = vsyncadd [#allocation3], 4294967168 }
 0x1cd   :  { %241 = vsyncpa [#allocation3], 1 }

</bundles_post_ra>
